<compile_context>
chip_gen: v7x
topology: tpu7x:2x2x1
jax: 0.10.0
libtpu: 0.0.40
codegen_flags: <defaults>
</compile_context>

<pallas_src>
import math

import jax
import jax.numpy as jnp
from jax.experimental import pallas as pl
from jax.experimental.pallas import tpu as pltpu

DROPOUT_P = 0.05


def _attn_kernel(q_ref, k_ref, v_ref, mask_ref, u_ref, o_ref):
    # One batch element per grid step; all heads fused.
    q = q_ref[...].astype(jnp.float32)      # (H, S, D)
    k = k_ref[...].astype(jnp.float32)      # (H, S, D)
    v = v_ref[...].astype(jnp.float32)      # (H, S, D)
    m = mask_ref[...].astype(jnp.float32)   # (S, S) — broadcast over heads
    u = u_ref[...]                          # (H, S, S) uniform [0, 1)

    scale = 1.0 / math.sqrt(q.shape[-1])

    # qk = q @ k^T / sqrt(d) + mask   (batched over heads on the MXU)
    s = jnp.einsum("hqd,hkd->hqk", q, k,
                   preferred_element_type=jnp.float32) * scale
    s = s + m[None, :, :]

    # numerically-stable softmax along the key axis
    s_max = jnp.max(s, axis=-1, keepdims=True)
    p = jnp.exp(s - s_max)
    inv_l = 1.0 / jnp.sum(p, axis=-1, keepdims=True)
    attn = p * inv_l

    # inverted dropout: keep w.p. (1-p), scale kept weights by 1/(1-p).
    # keep * const * attn is one convert + one vmul (no select).
    keep = (u >= DROPOUT_P).astype(jnp.float32)
    attn = attn * (keep * (1.0 / (1.0 - DROPOUT_P)))

    # output = attn_weight @ v   (batched over heads)
    o_ref[...] = jnp.einsum("hqk,hkd->hqd", attn, v,
                            preferred_element_type=jnp.float32).astype(o_ref.dtype)


def sdpa_dropout(query, key, value, attn_mask, seed=0):
    B, H, S, D = query.shape
    assert attn_mask.shape == (B, 1, S, S)

    # TODO(synk): dropout random bits are drawn host-side because
    # pltpu.prng_seed / pltpu.prng_random_bits have no interpret/CPU lowering;
    # on a TPU-only path this can move in-kernel (one seed + one bits draw for
    # the whole block).
    dropout_u = jax.random.uniform(jax.random.PRNGKey(seed), (B, H, S, S),
                                   dtype=jnp.float32)

    return pl.pallas_call(
        _attn_kernel,
        out_shape=jax.ShapeDtypeStruct((B, H, S, D), query.dtype),
        grid=(B,),
        in_specs=[
            pl.BlockSpec((None, H, S, D), lambda b: (b, 0, 0, 0)),     # q
            pl.BlockSpec((None, H, S, D), lambda b: (b, 0, 0, 0)),     # k
            pl.BlockSpec((None, H, S, D), lambda b: (b, 0, 0, 0)),     # v
            pl.BlockSpec((None, None, S, S), lambda b: (b, 0, 0, 0)),  # mask
            pl.BlockSpec((None, H, S, S), lambda b: (b, 0, 0, 0)),     # dropout u
        ],
        out_specs=pl.BlockSpec((None, H, S, D), lambda b: (b, 0, 0, 0)),
        compiler_params=pltpu.CompilerParams(
            dimension_semantics=("parallel",),
        ),
    )(query, key, value, attn_mask, dropout_u)


if __name__ == "__main__":
    B, H, S, D = 2, 2, 8, 16
    k0 = jax.random.PRNGKey(0)
    kq, kk, kv, km = jax.random.split(k0, 4)

    query = jax.random.normal(kq, (B, H, S, D), dtype=jnp.float32)
    key_t = jax.random.normal(kk, (B, H, S, D), dtype=jnp.float32)
    value = jax.random.normal(kv, (B, H, S, D), dtype=jnp.float32)
    attn_mask = jax.random.normal(km, (B, 1, S, S), dtype=jnp.float32)

    out = sdpa_dropout(query, key_t, value, attn_mask, seed=0)
    jax.block_until_ready(out)

    assert out.shape == (B, H, S, D)
    assert bool(jnp.all(jnp.isfinite(out)))
    print("KERNEL_OK")
</pallas_src>

<mosaic_0001>
module attributes {stable_mosaic.version = 11 : i64} {
  func.func @_attn_kernel(%arg0: i32, %arg1: memref<1x2x8x16xf32, #tpu.memory_space<vmem>>, %arg2: memref<1x2x8x16xf32, #tpu.memory_space<vmem>>, %arg3: memref<1x2x8x16xf32, #tpu.memory_space<vmem>>, %arg4: memref<1x1x8x8xf32, #tpu.memory_space<vmem>>, %arg5: memref<1x2x8x8xf32, #tpu.memory_space<vmem>>, %arg6: memref<1x2x8x16xf32, #tpu.memory_space<vmem>>) attributes {dimension_semantics = [#tpu.dimension_semantics<parallel>], iteration_bounds = array<i64: 2>, scalar_prefetch = 0 : i64, scratch_operands = 0 : i64, tpu.core_type = #tpu.core_type<tc>, window_params = [{transform_indices = @transform_0, window_bounds = array<i64: 1, 2, 8, 16>}, {transform_indices = @transform_1, window_bounds = array<i64: 1, 2, 8, 16>}, {transform_indices = @transform_2, window_bounds = array<i64: 1, 2, 8, 16>}, {transform_indices = @transform_3, window_bounds = array<i64: 1, 1, 8, 8>}, {transform_indices = @transform_4, window_bounds = array<i64: 1, 2, 8, 8>}, {transform_indices = @transform_5, window_bounds = array<i64: 1, 2, 8, 16>}]} {
    %c0 = arith.constant 0 : index
    %c0_0 = arith.constant 0 : index
    %c0_1 = arith.constant 0 : index
    %c0_2 = arith.constant 0 : index
    %0 = vector.load %arg1[%c0, %c0_0, %c0_1, %c0_2] : memref<1x2x8x16xf32, #tpu.memory_space<vmem>>, vector<1x2x8x16xf32>
    %1 = vector.shape_cast %0 : vector<1x2x8x16xf32> to vector<2x8x16xf32>
    %c0_3 = arith.constant 0 : index
    %c0_4 = arith.constant 0 : index
    %c0_5 = arith.constant 0 : index
    %c0_6 = arith.constant 0 : index
    %2 = vector.load %arg2[%c0_3, %c0_4, %c0_5, %c0_6] : memref<1x2x8x16xf32, #tpu.memory_space<vmem>>, vector<1x2x8x16xf32>
    %3 = vector.shape_cast %2 : vector<1x2x8x16xf32> to vector<2x8x16xf32>
    %c0_7 = arith.constant 0 : index
    %c0_8 = arith.constant 0 : index
    %c0_9 = arith.constant 0 : index
    %c0_10 = arith.constant 0 : index
    %4 = vector.load %arg3[%c0_7, %c0_8, %c0_9, %c0_10] : memref<1x2x8x16xf32, #tpu.memory_space<vmem>>, vector<1x2x8x16xf32>
    %5 = vector.shape_cast %4 : vector<1x2x8x16xf32> to vector<2x8x16xf32>
    %c0_11 = arith.constant 0 : index
    %c0_12 = arith.constant 0 : index
    %c0_13 = arith.constant 0 : index
    %c0_14 = arith.constant 0 : index
    %6 = vector.load %arg4[%c0_11, %c0_12, %c0_13, %c0_14] : memref<1x1x8x8xf32, #tpu.memory_space<vmem>>, vector<1x1x8x8xf32>
    %7 = vector.shape_cast %6 : vector<1x1x8x8xf32> to vector<8x8xf32>
    %c0_15 = arith.constant 0 : index
    %c0_16 = arith.constant 0 : index
    %c0_17 = arith.constant 0 : index
    %c0_18 = arith.constant 0 : index
    %8 = vector.load %arg5[%c0_15, %c0_16, %c0_17, %c0_18] : memref<1x2x8x8xf32, #tpu.memory_space<vmem>>, vector<1x2x8x8xf32>
    %9 = vector.shape_cast %8 : vector<1x2x8x8xf32> to vector<2x8x8xf32>
    "tpu.trace_start"() <{level = 10 : i32, message = "hqd,hkd->hqk"}> : () -> ()
    %cst = arith.constant dense<0.000000e+00> : vector<2x8x8xf32>
    %10 = tpu.matmul %1, %3, %cst {dimension_numbers = #tpu.dot_dimension_numbers<[2], [2], [1], [1], [0, 0, 0, 1, 1, 1], [0], [0]>} : vector<2x8x16xf32>, vector<2x8x16xf32>, vector<2x8x8xf32> -> vector<2x8x8xf32>
    "tpu.trace_stop"() : () -> ()
    %cst_19 = arith.constant 2.500000e-01 : f32
    %11 = vector.broadcast %cst_19 : f32 to vector<2x8x8xf32>
    %12 = arith.mulf %10, %11 : vector<2x8x8xf32>
    %13 = vector.shape_cast %7 : vector<8x8xf32> to vector<1x8x8xf32>
    %14 = vector.broadcast %13 : vector<1x8x8xf32> to vector<2x8x8xf32>
    %15 = arith.addf %12, %14 : vector<2x8x8xf32>
    %cst_20 = arith.constant dense<0xFF800000> : vector<2x8xf32>
    %16 = vector.multi_reduction <maximumf>, %15, %cst_20 [2] : vector<2x8x8xf32> to vector<2x8xf32>
    %17 = vector.shape_cast %16 : vector<2x8xf32> to vector<2x8x1xf32>
    %18 = vector.broadcast %17 : vector<2x8x1xf32> to vector<2x8x8xf32>
    %19 = arith.subf %15, %18 : vector<2x8x8xf32>
    %20 = math.exp %19 : vector<2x8x8xf32>
    %cst_21 = arith.constant dense<0.000000e+00> : vector<2x8xf32>
    %21 = vector.multi_reduction <add>, %20, %cst_21 [2] : vector<2x8x8xf32> to vector<2x8xf32>
    %22 = vector.shape_cast %21 : vector<2x8xf32> to vector<2x8x1xf32>
    %cst_22 = arith.constant 1.000000e+00 : f32
    %23 = vector.broadcast %cst_22 : f32 to vector<2x8x1xf32>
    %24 = arith.divf %23, %22 : vector<2x8x1xf32>
    %25 = vector.broadcast %24 : vector<2x8x1xf32> to vector<2x8x8xf32>
    %26 = arith.mulf %20, %25 : vector<2x8x8xf32>
    %cst_23 = arith.constant 5.000000e-02 : f32
    %27 = vector.broadcast %cst_23 : f32 to vector<2x8x8xf32>
    %28 = arith.cmpf oge, %9, %27 : vector<2x8x8xf32>
    %29 = arith.extui %28 : vector<2x8x8xi1> to vector<2x8x8xi32>
    %30 = arith.sitofp %29 : vector<2x8x8xi32> to vector<2x8x8xf32>
    %cst_24 = arith.constant 1.05263162 : f32
    %31 = vector.broadcast %cst_24 : f32 to vector<2x8x8xf32>
    %32 = arith.mulf %30, %31 : vector<2x8x8xf32>
    %33 = arith.mulf %26, %32 : vector<2x8x8xf32>
    "tpu.trace_start"() <{level = 10 : i32, message = "hqk,hkd->hqd"}> : () -> ()
    %cst_25 = arith.constant dense<0.000000e+00> : vector<2x8x16xf32>
    %34 = tpu.matmul %33, %5, %cst_25 {dimension_numbers = #tpu.dot_dimension_numbers<[2], [1], [1], [2], [0, 0, 0, 1, 1, 2], [0], [0]>} : vector<2x8x8xf32>, vector<2x8x16xf32>, vector<2x8x16xf32> -> vector<2x8x16xf32>
    "tpu.trace_stop"() : () -> ()
    %c0_26 = arith.constant 0 : index
    %c0_27 = arith.constant 0 : index
    %c0_28 = arith.constant 0 : index
    %c0_29 = arith.constant 0 : index
    %35 = vector.load %arg6[%c0_26, %c0_27, %c0_28, %c0_29] : memref<1x2x8x16xf32, #tpu.memory_space<vmem>>, vector<1x2x8x16xf32>
    %36 = vector.shape_cast %35 : vector<1x2x8x16xf32> to vector<2x8x16xf32>
    %37 = vector.shape_cast %34 : vector<2x8x16xf32> to vector<1x2x8x16xf32>
    tpu.vector_store %arg6[%c0_26, %c0_27, %c0_28, %c0_29], %37 {strides = array<i32>} : memref<1x2x8x16xf32, #tpu.memory_space<vmem>>, vector<1x2x8x16xf32>,
    return
  }
  func.func @transform_0(%arg0: i32) -> (i32, i32, i32, i32) {
    %c0_i32 = arith.constant 0 : i32
    %c0_i32_0 = arith.constant 0 : i32
    %c0_i32_1 = arith.constant 0 : i32
    %c0_i32_2 = arith.constant 0 : i32
    return %arg0, %c0_i32, %c0_i32_0, %c0_i32_1 : i32, i32, i32, i32
  }
  func.func @transform_1(%arg0: i32) -> (i32, i32, i32, i32) {
    %c0_i32 = arith.constant 0 : i32
    %c0_i32_0 = arith.constant 0 : i32
    %c0_i32_1 = arith.constant 0 : i32
    %c0_i32_2 = arith.constant 0 : i32
    return %arg0, %c0_i32, %c0_i32_0, %c0_i32_1 : i32, i32, i32, i32
  }
  func.func @transform_2(%arg0: i32) -> (i32, i32, i32, i32) {
    %c0_i32 = arith.constant 0 : i32
    %c0_i32_0 = arith.constant 0 : i32
    %c0_i32_1 = arith.constant 0 : i32
    %c0_i32_2 = arith.constant 0 : i32
    return %arg0, %c0_i32, %c0_i32_0, %c0_i32_1 : i32, i32, i32, i32
  }
  func.func @transform_3(%arg0: i32) -> (i32, i32, i32, i32) {
    %c0_i32 = arith.constant 0 : i32
    %c0_i32_0 = arith.constant 0 : i32
    %c0_i32_1 = arith.constant 0 : i32
    %c0_i32_2 = arith.constant 0 : i32
    return %arg0, %c0_i32, %c0_i32_0, %c0_i32_1 : i32, i32, i32, i32
  }
  func.func @transform_4(%arg0: i32) -> (i32, i32, i32, i32) {
    %c0_i32 = arith.constant 0 : i32
    %c0_i32_0 = arith.constant 0 : i32
    %c0_i32_1 = arith.constant 0 : i32
    %c0_i32_2 = arith.constant 0 : i32
    return %arg0, %c0_i32, %c0_i32_0, %c0_i32_1 : i32, i32, i32, i32
  }
  func.func @transform_5(%arg0: i32) -> (i32, i32, i32, i32) {
    %c0_i32 = arith.constant 0 : i32
    %c0_i32_0 = arith.constant 0 : i32
    %c0_i32_1 = arith.constant 0 : i32
    %c0_i32_2 = arith.constant 0 : i32
    return %arg0, %c0_i32, %c0_i32_0, %c0_i32_1 : i32, i32, i32, i32
  }
}

</mosaic_0001>

<bundles_post_ra>
// kernel: tpu_custom_call.1
= control target key start
LH: loop header
LB: loop body
LE: loop exit
PB: predicated region body
PF: predicated region fallthrough
CT: control target
= control target key end

     0   :  { %s1695_s0 = inlined_call_operand.hbm [shape: f32[2,2,8,16], index: 0, kind: input, shape index: {}]   ;;  %s1696_s1 = inlined_call_operand.hbm [shape: f32[2,2,8,16], index: 1, kind: input, shape index: {}]   ;;  %s1697_s2 = inlined_call_operand.hbm [shape: f32[2,2,8,16], index: 2, kind: input, shape index: {}]   ;;  %s1698_s3 = inlined_call_operand.hbm [shape: f32[2,1,8,8], index: 3, kind: input, shape index: {}]   ;;  %s1699_s4 = inlined_call_operand.hbm [shape: f32[2,2,8,8], index: 4, kind: input, shape index: {}]   ;;  %s1700_s5 = inlined_call_operand.hbm [shape: f32[2,2,8,16], index: 5, kind: output, shape index: {}]  }
   0x1   :  { %1715 = sst [smem:[#allocation21_spill]] %s1695_s0 }
   0x2   :  { %1716 = sst [smem:[#allocation22_spill]] %s1696_s1 }
   0x3   :  { %1717 = sst [smem:[#allocation23_spill]] %s1698_s3 }
   0x4   :  { %10 = vsyncpa [#allocation3], 0 }
   0x5   :  { %12 = vsyncpa [#allocation3 + $0x1], 0 }
   0x6   :  { %13 = vsyncpa [#allocation6], 0 }
   0x7   :  { %15 = vsyncpa [#allocation6 + $0x1], 0 }
   0x8   :  { %16 = vsyncpa [#allocation9], 0 }
   0x9   :  { %18 = vsyncpa [#allocation9 + $0x1], 0 }
   0xa   :  { %19 = vsyncpa [#allocation4], 0 }
   0xb   :  { %21 = vsyncpa [#allocation4 + $0x1], 0  ;;  %s1334_s18 = smov 0   ;;  %s1336_s19 = smov 0  }
   0xc   :  { %s1338_s20 = smov 0   ;;  %s1340_s21 = smov 0  }
   0xd LB: > { %1718 = sst [smem:[#allocation16_spill]] %s1286_s20  ;;  %s1355_s22 = sadd.s32 4294967295, %s1290_s21   ;;  %s1290_s21 = sphi %s1340_s21, %s1744_s21   ;;  %s1286_s20 = sphi %s1338_s20, %s1746_s20   ;;  %s1282_s19 = sphi %s1336_s19, %s1748_s19   ;;  %s1278_s18 = sphi %s1334_s18, %s1747_s18  }
   0xe   : > { %1719 = sst [smem:[#allocation17_spill]] %s1290_s21  ;;  %s916_s23 = sadd.s32 4294967294, %s1290_s21  }
   0xf   : > { %s1359_s24 = sadd.s32 1, %s1290_s21   ;;  %s34_s25 = sadd.s32 1, %s1286_s20 }
  0x10   : > { %1720 = sst [smem:[#allocation18_spill]] %s1359_s24  ;;  %s31_s26 = ssub.s32 %s1290_s21, %s1359_s24 }
  0x11   : > { %p41_p0 = scmp.ne.s32.totalorder %s1286_s20, %s1282_s19  ;;  %p32_p1 = scmp.eq.s32.totalorder %s31_s26, 0 }
  0x12   : > { %p42_p2 = scmp.eq.s32.totalorder %s1290_s21, 0  ;;  %p47_p3 = scmp.ne.s32.totalorder %s1282_s19, %s1278_s18 }
  0x13   : > { %p48_p4 = scmp.eq.s32.totalorder %s1355_s22, 0  ;;  %p175_p7 = scmp.eq.s32.totalorder %s1355_s22, 1 }
  0x14   : > { %s1371_s27 = scalar_select %p32_p1, %s1286_s20, %s34_s25  }
  0x15   : > { %p43_p5 = por %p42_p2, %p41_p0  ;;  %p1373_p6 = por %p48_p4, %p47_p3 }
  0x16   : > { %1721 = sst [smem:[#allocation19_spill]] %s1371_s27  ;;  %p181_p8 = scmp.eq.s32.totalorder %s916_s23, 1 }
  0x17   : > { %s1722_s28 = scalar_select %p1373_p6, 1, 0 }
  0x18   : > { %p1018_p10 = scmp.lt.s32.totalorder %s1290_s21, 2  ;;  %p1380_p11 = por %p175_p7, %p41_p0 }
  0x19   : > { %p1384_p12 = por %p181_p8, %p47_p3  ;;  %s1389_s6 = sand.u32 1, %s1286_s20  }
  0x1a   : > { %s1723_s29 = scalar_select %p1380_p11, 1, 0 }
  0x1b   : > { %s1724_s30 = scalar_select %p1384_p12, 1, 0 }
  0x1c   : > { %s1392_s7 = sshll.u32 %s1290_s21, 8  ;;  %s1395_s8 = sshll.u32 %s1389_s6, 4 }
  0x1d   : > { %1725 = sst [smem:[#allocation20_spill]] %s1724_s30  ;;  %p1397_p13 = pnand %p1018_p10, %p43_p5 }
  0x1e   : > { %s1701_s10 = sand.u32 1, %s1290_s21   ;;  %s1727_s1 = sld [smem:[#allocation22_spill]] }
  0x1f   : > { %s1726_s9 = scalar_select %p1397_p13, 1, 0 }
  0x20   : > { %s226_s14 = scalar_lea.vmem [#allocation5], %s1395_s8  ;;  %s1414_s16 = scalar_lea.sflag [#allocation6], %s1701_s10 }
  0x21   : > { %s233_s15 = sshll.u32 %s226_s14, 4  ;;  %p1420_p2 = pneg %p1397_p13  ;;  %s1409_s15 = int_to_ptr.vmem [resolvable:$true] %s233_s15 }
  0x24   : > { %s1406_s13 = scalar_lea.hbm %s1727_s1, %s1392_s7  ;;  %s1071_s11 = scalar_lea.hbm %s1727_s1, 512 }
  0x25   : > { %s1066_s17 = scalar_lea.hbm %s1406_s13, 256  ;;  %p1072_p5 = scmp.lt.u32.totalorder %s1406_s13, %s1727_s1 }
  0x26   : > { %p1067_p1 = scmp.ne.s32.totalorder %s1406_s13, %s1066_s17  ;;  %p1073_p7 = scmp.lt.u32.totalorder %s1071_s11, %s1066_s17 }
  0x27   : > { %p1075_p10 = scmp.lt.u32.totalorder %s1066_s17, %s1406_s13 }
  0x28   : > { %p1069_p3 = pnand %p1420_p2, %p1067_p1  ;;  %p1074_p8 = por %p1073_p7, %p1072_p5 }
  0x2a   : > { %p1070_p4 = pneg %p1069_p3  ;;  %p1076_p9 = por %p1075_p10, %p1074_p8 }
  0x2c   : > { %p1077_p0 = pnand %p1076_p9, %p1070_p4 }
  0x2e   : > { %1080 = shalt.err (!%p1077_p0)
}
  0x2f   : > { %s1081_s10 = scalar_lea.vmem %s1409_s15, 256  ;;  %s1292_s25 = smov [#allocation5]  }
  0x30   : > { %p1082_p1 = scmp.ne.s32.totalorder %s1409_s15, %s1081_s10  ;;  %s1086_s26 = sshll.u32 %s1292_s25, 4  ;;  %s1087_s26 = int_to_ptr.vmem [resolvable:$false] %s1086_s26 }
  0x31   : > { %s1088_s12 = scalar_lea.vmem %s1087_s26, 512  ;;  %p1089_p11 = scmp.lt.s32.totalorder %s1409_s15, %s1087_s26 }
  0x32   : > { %p1084_p3 = pnand %p1082_p1, %p1420_p2  ;;  %p1090_p6 = scmp.lt.s32.totalorder %s1088_s12, %s1081_s10 }
  0x34   : > { %p1085_p12 = pneg %p1084_p3  ;;  %p1091_p5 = por %p1090_p6, %p1089_p11 }
  0x36   : > { %p1092_p7 = pnand %p1091_p5, %p1085_p12 }
  0x38   : > { %1095 = shalt.err (!%p1092_p7)
}
  0x39   : > { %s1705_s17 = smov 128   ;;  %s1707_s11 = smov 8  }
  0x3a   : > { %1004 = dma.hbm_to_vmem [thread:$0]  (!%p1397_p13), %s1406_s13, 256, %s1409_s15, %s1414_s16, %s1705_s17, %s1705_s17, %s1707_s11  }
  0x3b   : > { %p301_p6 = scmp.lt.s32.totalorder %s1290_s21, 3  ;;  %s928_s10 = sshll.u32 %s1389_s6, 3 }
  0x3c   : > { %s929_s14 = sshll.u32 %s1290_s21, 7  ;;  %p1729_p9 = scmp.ge.s32.totalorder %s1290_s21, 1 }
  0x3d   : > { %s1731_s3 = sld [smem:[#allocation23_spill]]  ;;  %s268_s27 = scalar_lea.vmem [#allocation8], %s928_s10 }
  0x3e   : > { %p1452_p11 = pnand %p1729_p9, %p301_p6  ;;  %s275_s20 = sshll.u32 %s268_s27, 4  ;;  %s276_s20 = int_to_ptr.vmem [resolvable:$true] %s275_s20 }
  0x3f   : > { %s1732_s13 = sand.u32 1, %s1290_s21  }
  0x40   : > { %s1730_s25 = scalar_select %p1452_p11, 1, 0 }
  0x41   : > { %s1463_s15 = scalar_lea.sflag [#allocation9], %s1732_s13 }
  0x43   : > { %s1459_s1 = scalar_lea.hbm %s1731_s3, %s929_s14  ;;  %s1101_s14 = scalar_lea.hbm %s1731_s3, 256 }
  0x44   : > { %s1096_s17 = scalar_lea.hbm %s1459_s1, 128  ;;  %p1102_p8 = scmp.lt.u32.totalorder %s1459_s1, %s1731_s3 }
  0x45   : > { %p1097_p12 = scmp.ne.s32.totalorder %s1459_s1, %s1096_s17  ;;  %p1103_p10 = scmp.lt.u32.totalorder %s1101_s14, %s1096_s17 }
  0x46   : > { %p1105_p3 = scmp.lt.u32.totalorder %s1096_s17, %s1459_s1 }
  0x47   : > { %p1099_p0 = pnand %p1097_p12, %p1420_p2  ;;  %p1104_p1 = por %p1103_p10, %p1102_p8 }
  0x49   : > { %p1100_p4 = pneg %p1099_p0  ;;  %p1106_p5 = por %p1105_p3, %p1104_p1 }
  0x4b   : > { %p1107_p7 = pnand %p1106_p5, %p1100_p4 }
  0x4d   : > { %1110 = shalt.err (!%p1107_p7)
}
  0x4e   : > { %s1111_s27 = scalar_lea.vmem %s276_s20, 128  ;;  %s1295_s10 = smov [#allocation8]  }
  0x4f   : > { %p1112_p6 = scmp.ne.s32.totalorder %s276_s20, %s1111_s27  ;;  %s1116_s13 = sshll.u32 %s1295_s10, 4  ;;  %s1117_s13 = int_to_ptr.vmem [resolvable:$false] %s1116_s13 }
  0x50   : > { %s1118_s24 = scalar_lea.vmem %s1117_s13, 256  ;;  %p1119_p0 = scmp.lt.s32.totalorder %s276_s20, %s1117_s13 }
  0x51   : > { %p1114_p9 = pnand %p1112_p6, %p1420_p2  ;;  %p1120_p11 = scmp.lt.s32.totalorder %s1118_s24, %s1111_s27 }
  0x53   : > { %p1115_p12 = pneg %p1114_p9  ;;  %p1121_p13 = por %p1120_p11, %p1119_p0 }
  0x55   : > { %p1122_p8 = pnand %p1121_p13, %p1115_p12 }
  0x57   : > { %1125 = shalt.err (!%p1122_p8)
}
  0x58   : > { %p1733_p10 = scmp.ne.s32.totalorder %s1726_s9, 0  ;;  %s1734_s0 = sld [smem:[#allocation21_spill]] }
  0x59   : > { %s205_s26 = scalar_lea.vmem [#allocation2], %s1395_s8  ;;  %s1496_s13 = scalar_lea.hbm %s1697_s2, %s1392_s7 }
  0x5a   : > { %1010 = dma.hbm_to_vmem [thread:$0]  (!%p1733_p10), %s1459_s1, 128, %s276_s20, %s1463_s15  }
  0x5b   : > { %s212_s12 = sshll.u32 %s205_s26, 4  ;;  %s202_s24 = scalar_lea.sflag [#allocation3], %s1389_s6  ;;  %s1490_s12 = int_to_ptr.vmem [resolvable:$true] %s212_s12 }
  0x5e   : > { %s1487_s14 = scalar_lea.hbm %s1734_s0, %s1392_s7  ;;  %s1131_s11 = scalar_lea.hbm %s1734_s0, 512 }
  0x5f   : > { %s1126_s1 = scalar_lea.hbm %s1487_s14, 256  ;;  %p1132_p1 = scmp.lt.u32.totalorder %s1487_s14, %s1734_s0 }
  0x60   : > { %p1127_p13 = scmp.ne.s32.totalorder %s1487_s14, %s1126_s1  ;;  %p1133_p3 = scmp.lt.u32.totalorder %s1131_s11, %s1126_s1 }
  0x61   : > { %p1135_p7 = scmp.lt.u32.totalorder %s1126_s1, %s1487_s14 }
  0x62   : > { %p1129_p11 = pnand %p1127_p13, %p1420_p2  ;;  %p1134_p5 = por %p1133_p3, %p1132_p1 }
  0x64   : > { %p1130_p4 = pneg %p1129_p11  ;;  %p1136_p6 = por %p1135_p7, %p1134_p5 }
  0x66   : > { %p1137_p9 = pnand %p1136_p6, %p1130_p4 }
  0x68   : > { %1140 = shalt.err (!%p1137_p9)
}
  0x69   : > { %s1141_s26 = scalar_lea.vmem %s1490_s12, 256  ;;  %s1296_s27 = smov [#allocation2]  }
  0x6a   : > { %p1142_p12 = scmp.ne.s32.totalorder %s1490_s12, %s1141_s26  ;;  %s1146_s10 = sshll.u32 %s1296_s27, 4  ;;  %s1147_s10 = int_to_ptr.vmem [resolvable:$false] %s1146_s10 }
  0x6b   : > { %s1148_s3 = scalar_lea.vmem %s1147_s10, 512  ;;  %p1149_p13 = scmp.lt.s32.totalorder %s1490_s12, %s1147_s10 }
  0x6c   : > { %p1144_p0 = pnand %p1142_p12, %p1420_p2  ;;  %p1150_p11 = scmp.lt.s32.totalorder %s1148_s3, %s1141_s26 }
  0x6e   : > { %p1145_p8 = pneg %p1144_p0  ;;  %p1151_p1 = por %p1150_p11, %p1149_p13 }
  0x70   : > { %p1152_p3 = pnand %p1151_p1, %p1145_p8 }
  0x72   : > { %1155 = shalt.err (!%p1152_p3)
}
  0x73   : > { %s1735_s21 = smov 8   ;;  %s1736_s1 = smov 128  }
  0x74   : > { %1001 = dma.hbm_to_vmem [thread:$0]  (!%p1733_p10), %s1487_s14, 256, %s1490_s12, %s202_s24, %s1736_s1, %s1736_s1, %s1735_s21  }
  0x75   : > { %s247_s20 = scalar_lea.vmem [#allocation7], %s1395_s8  ;;  %s1532_s27 = scalar_lea.hbm %s1699_s4, %s1392_s7 }
  0x76   : > { %s254_s17 = sshll.u32 %s247_s20, 4  ;;  %s1156_s6 = scalar_lea.hbm %s1496_s13, 256  ;;  %s1526_s17 = int_to_ptr.vmem [resolvable:$true] %s254_s17 }
  0x77   : > { %p1157_p4 = scmp.ne.s32.totalorder %s1496_s13, %s1156_s6  ;;  %s1161_s0 = scalar_lea.hbm %s1697_s2, 512 }
  0x78   : > { %p1162_p6 = scmp.lt.u32.totalorder %s1496_s13, %s1697_s2  ;;  %p1163_p9 = scmp.lt.u32.totalorder %s1161_s0, %s1156_s6 }
  0x79   : > { %p1159_p5 = pnand %p1157_p4, %p1420_p2  ;;  %p1165_p0 = scmp.lt.u32.totalorder %s1156_s6, %s1496_s13 }
  0x7a   : > { %p1164_p12 = por %p1163_p9, %p1162_p6 }
  0x7b   : > { %p1160_p7 = pneg %p1159_p5 }
  0x7c   : > { %p1166_p8 = por %p1165_p0, %p1164_p12 }
  0x7e   : > { %p1167_p13 = pnand %p1166_p8, %p1160_p7 }
  0x80   : > { %1170 = shalt.err (!%p1167_p13)
}
  0x81   : > { %s1171_s7 = scalar_lea.vmem %s1526_s17, 256  ;;  %s1297_s12 = smov [#allocation7]  }
  0x82   : > { %p1172_p11 = scmp.ne.s32.totalorder %s1526_s17, %s1171_s7  ;;  %s1176_s24 = sshll.u32 %s1297_s12, 4  ;;  %s1177_s24 = int_to_ptr.vmem [resolvable:$false] %s1176_s24 }
  0x83   : > { %s1178_s30 = scalar_lea.vmem %s1177_s24, 512  ;;  %p1179_p4 = scmp.lt.s32.totalorder %s1526_s17, %s1177_s24 }
  0x84   : > { %p1174_p1 = pnand %p1172_p11, %p1420_p2  ;;  %p1180_p5 = scmp.lt.s32.totalorder %s1178_s30, %s1171_s7 }
  0x86   : > { %p1175_p3 = pneg %p1174_p1  ;;  %p1181_p6 = por %p1180_p5, %p1179_p4 }
  0x88   : > { %p1182_p9 = pnand %p1181_p6, %p1175_p3 }
  0x8a   : > { %1185 = shalt.err (!%p1182_p9)
}
  0x8b   : > { %1007 = dma.hbm_to_vmem [thread:$0]  (!%p1733_p10), %s1496_s13, 256, %s1526_s17, %s1414_s16, %s1736_s1, %s1736_s1, %s1735_s21  }
  0x8c   : > { %s286_s0 = scalar_lea.vmem [#allocation10], %s1395_s8  ;;  %s1186_s11 = scalar_lea.hbm %s1532_s27, 256 }
  0x8d   : > { %s293_s20 = sshll.u32 %s286_s0, 4  ;;  %p1187_p7 = scmp.ne.s32.totalorder %s1532_s27, %s1186_s11  ;;  %s1560_s20 = int_to_ptr.vmem [resolvable:$true] %s293_s20 }
  0x8e   : > { %s1191_s10 = scalar_lea.hbm %s1699_s4, 512  ;;  %p1192_p8 = scmp.lt.u32.totalorder %s1532_s27, %s1699_s4 }
  0x8f   : > { %p1189_p12 = pnand %p1187_p7, %p1420_p2  ;;  %p1193_p13 = scmp.lt.u32.totalorder %s1191_s10, %s1186_s11 }
  0x90   : > { %p1195_p1 = scmp.lt.u32.totalorder %s1186_s11, %s1532_s27 }
  0x91   : > { %p1190_p0 = pneg %p1189_p12  ;;  %p1194_p11 = por %p1193_p13, %p1192_p8 }
  0x93   : > { %p1196_p3 = por %p1195_p1, %p1194_p11 }
  0x95   : > { %p1197_p4 = pnand %p1196_p3, %p1190_p0 }
  0x97   : > { %1200 = shalt.err (!%p1197_p4)
}
  0x98   : > { %s1201_s8 = scalar_lea.vmem %s1560_s20, 256  ;;  %s1298_s16 = smov [#allocation10]  }
  0x99   : > { %p1202_p5 = scmp.ne.s32.totalorder %s1560_s20, %s1201_s8  ;;  %s1206_s13 = sshll.u32 %s1298_s16, 4  ;;  %s1207_s13 = int_to_ptr.vmem [resolvable:$false] %s1206_s13 }
  0x9a   : > { %s1208_s17 = scalar_lea.vmem %s1207_s13, 512  ;;  %p1209_p7 = scmp.lt.s32.totalorder %s1560_s20, %s1207_s13 }
  0x9b   : > { %p1204_p6 = pnand %p1202_p5, %p1420_p2  ;;  %p1210_p12 = scmp.lt.s32.totalorder %s1208_s17, %s1201_s8 }
  0x9d   : > { %p1205_p9 = pneg %p1204_p6  ;;  %p1211_p8 = por %p1210_p12, %p1209_p7 }
  0x9f   : > { %p1212_p13 = pnand %p1211_p8, %p1205_p9 }
  0xa1   : > { %1215 = shalt.err (!%p1212_p13)
}
  0xa2   : > { %1013 = dma.hbm_to_vmem [thread:$0]  (!%p1733_p10), %s1532_s27, 256, %s1560_s20, %s1463_s15, %s1736_s1, %s1736_s1, %s1735_s21  }
  0xa3   : > { %p1737_p2 = scmp.ne.s32.totalorder %s1730_s25, 0 }
  0xa4   : > { %s1590_s23 = sand.u32 (!%p1737_p2), 1, %s1282_s19   ;;  %p1738_p0 = scmp.ne.s32.totalorder (!%p1737_p2), %s1722_s28, 0 }
  0xa5   : > { %305 = sbr.rel (%p1737_p2) target bundleno = 948 (0x3b4), region = 40  ;;  %s1593_s7 = sshll.u32 (!%p1737_p2), %s1590_s23, 4 }
  0xa6   : > { %s308_s9 = scalar_lea.sflag (!%p1737_p2), [#allocation3], %s1590_s23  ;;  %s311_s12 = scalar_lea.vmem (!%p1737_p2), [#allocation2], %s1593_s7 }
  0xac   : > { %1261 = dma.done.wait (%p1738_p0), %s308_s9, 256  }
  0xad   : > { %1263 = vsyncadd (%p1738_p0), %s308_s9, 4294967040  ;;  %s316_s25 = sand.u32 1, %s1355_s22   ;;  %s320_s21 = scalar_lea.vmem [#allocation5], %s1593_s7 }
  0xae   : > { %s317_s15 = scalar_lea.sflag [#allocation6], %s316_s25 }
  0xaf   : > { %1265 = dma.done.wait (%p1738_p0), %s317_s15, 512  }
  0xb0   : > { %1267 = vsyncadd (%p1738_p0), %s317_s15, 4294966784  ;;  %s937_s1 = sshll.u32 %s1590_s23, 3  ;;  %s329_s27 = scalar_lea.vmem [#allocation7], %s1593_s7 }
  0xb1   : > { %s335_s24 = scalar_lea.sflag [#allocation9], %s316_s25  ;;  %s338_s30 = scalar_lea.vmem [#allocation8], %s937_s1 }
  0xb2   : > { %1269 = dma.done.wait (%p1738_p0), %s335_s24, 384  }
  0xb3   : > { %1271 = vsyncadd (%p1738_p0), %s335_s24, 4294966912  ;;  %v1299_v0 = vmov 0.0   ;;  %vm1300_vm0 = vmmov 0   ;;  %vm403_vm1 = vcmask 130048   ;;  %v396_v1 = vld [vmem:[%s320_s21] sm:$0xff]  ;;  %v397_v2 = vld [vmem:[%s320_s21 + $0x8] sm:$0xff] }
  0xb4   : > { %966 = vmatprep.subr.mxu0 %v1299_v0  ;;  %968 = vmatprep.mubr.msk.f32.mxu0 %vm1300_vm0, %v1299_v0  ;;  %v394_v3 = vld [vmem:[%s311_s12] sm:$0xff]  ;;  %v395_v4 = vld [vmem:[%s311_s12 + $0x8] sm:$0xff]  ;;  %vm560_vm2 = vcmask 64512   ;;  %s347_s28 = scalar_lea.vmem [#allocation10], %s1593_s7  ;;  %s393_s0 = scalar_lea.vmem [#allocation11], %s1593_s7 }
  0xb5   : > { %971 = vmatprep.subr.mxu1 %v1299_v0  ;;  %973 = vmatprep.mubr.msk.f32.mxu1 %vm1300_vm0, %v1299_v0  ;;  %v400_v7 = vld [vmem:[%s338_s30] sm:$0xff]  ;;  %v399_v27 = vld [vmem:[%s329_s27 + $0x8] sm:$0xff]  ;;  %v401_v29 = vld [vmem:[%s347_s28] sm:$0xff]  ;;  %s757_s20 = sshll.u32 %s393_s0, 4  ;;  %s957_s11 = sshll.u32 %s1355_s22, 8  ;;  %s1645_s20 = int_to_ptr.vmem [resolvable:$true] %s757_s20 }
  0xb6   : > { %967 = vmatpush3.xpose.msk.msra.mxu0 %vm403_vm1, %v396_v1  ;;  %972 = vmatpush3.xpose.msk.msra.mxu1 %vm403_vm1, %v397_v2  ;;  %v398_v26 = vld [vmem:[%s329_s27] sm:$0xff]  ;;  %vm585_vm3 = vcmp.ge.f32.partialorder %v401_v29, 0.05  ;;  %v402_v31 = vld [vmem:[%s347_s28 + $0x8] sm:$0xff]  ;;  %s1650_s10 = scalar_lea.hbm %s1700_s5, %s957_s11  ;;  %s744_s3 = scalar_lea.sflag [#allocation4], %s1590_s23 }
  0xb7   : > { %976 = vmatprep.subr.mxu0 %v1299_v0  ;;  %981 = vmatprep.subr.mxu1 %v1299_v0  ;;  %v944_v32 = vsel %vm585_vm3, 1.0, %v1299_v0  ;;  %vm586_vm4 = vcmp.ge.f32.partialorder %v402_v31, 0.05  ;;  %s1216_s22 = scalar_lea.vmem %s1645_s20, 256  ;;  %p1739_p11 = scmp.ne.s32.totalorder %s1723_s29, 0 }
  0xb8   : > { %v591_v33 = vmul.f32 1.0526316, %v944_v32  ;;  %v945_v35 = vsel %vm586_vm4, 1.0, %v1299_v0  ;;  %p1217_p10 = scmp.ne.s32.totalorder %s1645_s20, %s1216_s22  ;;  %s1301_s14 = smov [#allocation11]  }
  0xb9   : > { %969 = vmatmul.mubr.msk.f32.vlgmr.msra.gmra.mrb[0].mxu0 %vm403_vm1, %v394_v3  ;;  %974 = vmatmul.mubr.msk.f32.vlgmr.msra.gmra.mrb[0].mxu1 %vm403_vm1, %v395_v4  ;;  %v592_v38 = vmul.f32 1.0526316, %v945_v35  ;;  %s1220_s8 = sshll.u32 %s1301_s14, 4  ;;  %s1221_s8 = int_to_ptr.vmem [resolvable:$false] %s1220_s8 }
  0xba   : > { %978 = vmatprep.mubr.msk.f32.mxu0 %vm1300_vm0, %v1299_v0  ;;  %983 = vmatprep.mubr.msk.f32.mxu1 %vm1300_vm0, %v1299_v0  ;;  %p1218_p1 = pnand %p1217_p10, %p1739_p11  ;;  %s1222_s16 = scalar_lea.vmem %s1221_s8, 512 }
  0xbb   : > { %977 = vmatpush3.msra.mxu0 %v398_v26  ;;  %982 = vmatpush3.msra.mxu1 %v399_v27  ;;  %p1223_p4 = scmp.lt.s32.totalorder %s1645_s20, %s1221_s8  ;;  %p1224_p5 = scmp.lt.s32.totalorder %s1222_s16, %s1216_s22 }
  0xbc   : > { %p1219_p3 = pneg %p1218_p1 }
  0xbd   : > { %p1225_p6 = por %p1224_p5, %p1223_p4 }
  0xbf   : > { %p1226_p9 = pnand %p1225_p6, %p1219_p3 }
 0x18c   : > { %v476_v5 = vpop.f32.mrb[0].mxu0  ;;  %v552_v6 = vpop.f32.mrb[0].mxu1 }
 0x18d   : > { %v556_v8 = vmul.f32 0.25, %v476_v5  ;;  %v970_v9 = vpop.f32.mrb[1].mxu0  ;;  %v557_v10 = vmul.f32 0.25, %v552_v6  ;;  %v975_v11 = vpop.f32.mrb[1].mxu1 }
 0x18f   : > { %v558_v12 = vadd.f32 %v556_v8, %v400_v7  ;;  %v559_v13 = vadd.f32 %v557_v10, %v400_v7 }
 0x191   : > { %v561_v14 = vsel %vm560_vm2, %v558_v12, -inf  ;;  %v564_v15 = vsel %vm560_vm2, %v559_v13, -inf }
 0x192   : > { %562 = vmax.xlane.f32.xlu0 %v561_v14 }
 0x196   : > { %565 = vmax.xlane.f32.xlu0 %v564_v15 }
 0x21f   : > { %v563_v16 = vpop.xlane.xlu0 %562 }
 0x220   : > { %v567_v17 = vsub.f32 %v558_v12, %v563_v16 }
 0x222   : > { %v569_v18 = vmul.f32 1.442695, %v567_v17 }
 0x223   : > { %v566_v19 = vpop.xlane.xlu0 %565 }
 0x224   : > { %1058 = vpow2.f32 %v569_v18  ;;  %v568_v20 = vsub.f32 %v559_v13, %v566_v19 }
 0x226   : > { %v571_v21 = vmul.f32 1.442695, %v568_v20 }
 0x228   : > { %1060 = vpow2.f32 %v571_v21 }
 0x22e   : > { %v1059_v22 = vpop.eup %1058 }
 0x22f   : > { %v573_v23 = vsel %vm560_vm2, %v1059_v22, 0.0 }
 0x230   : > { %574 = vadd.xlane.f32.xlu1 %v573_v23 }
 0x232   : > { %v1061_v24 = vpop.eup %1060 }
 0x233   : > { %v576_v25 = vsel %vm560_vm2, %v1061_v24, 0.0 }
 0x234   : > { %577 = vadd.xlane.f32.xlu1 %v576_v25 }
 0x2bd   : > { %v575_v28 = vpop.xlane.xlu1 %574 }
 0x2be   : > { %1062 = vrcp.f32 %v575_v28 }
 0x2c1   : > { %v578_v30 = vpop.xlane.xlu1 %577 }
 0x2c2   : > { %1064 = vrcp.f32 %v578_v30 }
 0x2c8   : > { %v1063_v34 = vpop.eup %1062 }
 0x2c9   : > { %v583_v36 = vmul.f32 %v1063_v34, %v1059_v22 }
 0x2cb   : > { %v593_v37 = vmul.f32 %v591_v33, %v583_v36 }
 0x2cc   : > { %v1065_v39 = vpop.eup %1064 }
 0x2cd   : > { %v584_v40 = vmul.f32 %v1065_v39, %v1061_v24  ;;  %979 = vmatmul.mubr.msk.f32.vlgmr.msra.gmra.mrb[2].mxu0 %vm560_vm2, %v593_v37 }
 0x2cf   : > { %v594_v41 = vmul.f32 %v592_v38, %v584_v40 }
 0x2d1   : > { %984 = vmatmul.mubr.msk.f32.vlgmr.msra.gmra.mrb[2].mxu1 %vm560_vm2, %v594_v41 }
 0x3a0   : > { %v664_v42 = vpop.f32.mrb[2].mxu0 }
 0x3a1   : > { %741 = vst.msk [vmem:[%s393_s0] sm:$0xff] %vm403_vm1, %v664_v42  ;;  %v980_v43 = vpop.f32.mrb[3].mxu0 }
 0x3a4   : > { %v737_v44 = vpop.f32.mrb[2].mxu1 }
 0x3a5   : > { %742 = vst.msk [vmem:[%s393_s0 + $0x8] sm:$0xff] %vm403_vm1, %v737_v44  ;;  %v985_v45 = vpop.f32.mrb[3].mxu1 }
 0x3a6   : > { %1229 = shalt.err (!%p1226_p9)
}
 0x3a7   : > { %s1230_s13 = scalar_lea.hbm %s1650_s10, 256  ;;  %s1234_s9 = scalar_lea.hbm %s1700_s5, 512 }
 0x3a8   : > { %p1231_p7 = scmp.ne.s32.totalorder %s1650_s10, %s1230_s13  ;;  %p1235_p13 = scmp.lt.u32.totalorder %s1650_s10, %s1700_s5 }
 0x3a9   : > { %p1236_p2 = scmp.lt.u32.totalorder %s1234_s9, %s1230_s13  ;;  %p1238_p10 = scmp.lt.u32.totalorder %s1230_s13, %s1650_s10 }
 0x3aa   : > { %p1232_p12 = pnand %p1231_p7, %p1739_p11 }
 0x3ab   : > { %p1237_p0 = por %p1236_p2, %p1235_p13 }
 0x3ac   : > { %p1233_p8 = pneg %p1232_p12 }
 0x3ad   : > { %p1239_p1 = por %p1238_p10, %p1237_p0 }
 0x3af   : > { %p1240_p3 = pnand %p1239_p1, %p1233_p8 }
 0x3b1   : > { %1243 = shalt.err (!%p1240_p3)
}
 0x3b2   : > { %s1302_s15 = smov 128   ;;  %s1303_s21 = smov 8  }
 0x3b3   : > { %996 = dma.vmem_to_hbm [thread:$0]  (%p1739_p11), %s1645_s20, 256, %s1650_s10, %s744_s3, %s1302_s15, %s1302_s15, %s1303_s21  }
 0x3b4 PF: > { %s1740_s1 = sld [smem:[#allocation20_spill]]  ;;  %s1741_s27 = sld [smem:[#allocation17_spill]] }
 0x3b5   : > { %s772_s24 = sand.u32 1, %s1278_s18  }
 0x3b6   : > { %s773_s30 = scalar_lea.sflag [#allocation4], %s772_s24 }
 0x3ba   : > { %p1742_p4 = scmp.ne.s32.totalorder %s1740_s1, 0  ;;  %p1743_p5 = scmp.ge.s32.totalorder %s1741_s27, 2 }
 0x3bc   : > { %p1015_p6 = pnand %p1743_p5, %p1742_p4 }
 0x3be   : > { %1273 = dma.done.wait (!%p1015_p6), %s773_s30, 256  }
 0x3bf   : > { %1275 = vsyncadd (!%p1015_p6), %s773_s30, 4294967040  ;;  %s1744_s21 = sld [smem:[#allocation18_spill]]  ;;  %s1745_s28 = sld [smem:[#allocation16_spill]] }
 0x3c0   : > { %s1746_s20 = sld [smem:[#allocation19_spill]]  ;;  %s1747_s18 = smov %s1282_s19 }
 0x3c5   : > { %p24_p9 = scmp.ge.s32.totalorder %s1744_s21, 4   ;;  %s1748_s19 = smov %s1745_s28 }
 0x3c7   :  { %26 = sbr.rel (!%p24_p9) target bundleno = 13 (0xd), region = 133 }
 0x3ce   :  { %778 = vsyncpa [#allocation3], 1 }
 0x3cf   :  { %780 = vsyncpa [#allocation3 + $0x1], 1 }
 0x3d0   :  { %781 = vsyncpa [#allocation6], 1 }
 0x3d1   :  { %783 = vsyncpa [#allocation6 + $0x1], 1 }
 0x3d2   :  { %784 = vsyncpa [#allocation9], 1 }
 0x3d3   :  { %786 = vsyncpa [#allocation9 + $0x1], 1 }
 0x3d4   :  { %787 = vsyncpa [#allocation4], 1 }
 0x3d5   :  { %789 = vsyncpa [#allocation4 + $0x1], 1 }

</bundles_post_ra>
